<compile_context>
chip_gen: v5e
topology: v5e:2x2
jax: 0.10.0
libtpu: 0.0.40
codegen_flags: <defaults>
</compile_context>

<pallas_src>
import functools

import jax
import jax.numpy as jnp
from jax.experimental import pallas as pl
from jax.experimental.pallas import tpu as pltpu

# ---------------- model config (small, synthetic) ----------------
N_EMBD = 32
N_HEAD = 4
HEAD_DIM = N_EMBD // N_HEAD
MLP_HIDDEN = 4 * N_EMBD
LN_EPS = 1e-5
NEG_INF = -1e30

# column offsets inside the packed bf16 weight slab (each block 128-lane aligned)
_W_SA_QKV = 0 * 128     # (C, 3C)
_W_SA_PROJ = 1 * 128    # (C, C)
_W_CA_QKV = 2 * 128     # (C, 3C)  = [ca_wq | ca_wkv]
_W_CA_PROJ = 3 * 128    # (C, C)
_W_MLP_W1 = 4 * 128     # (C, 4C)
_W_SLAB_COLS = 5 * 128

# constant (f32) slab layout: bias/LN rows first (8-row padded), then masks
_NP_ROWS = 16           # rows reserved for the 12 LN/bias rows (sublane aligned)


# ---------------- Pallas kernel: one batch element per grid step ----------------
def _decoder_layer_kernel(xenc_ref, w_ref, c_ref, w2_ref, out_ref, *, t_dec, t_enc):
    C = N_EMBD
    T, S = t_dec, t_enc
    HT = N_HEAD * T
    f32 = jnp.float32

    # ---- bf16 weight slab -> f32 working copies (cast once; f32 accumulation) ----
    sa_wqkv = w_ref[:, _W_SA_QKV:_W_SA_QKV + 3 * C].astype(f32)
    sa_wproj = w_ref[:, _W_SA_PROJ:_W_SA_PROJ + C].astype(f32)
    ca_wqkv = w_ref[:, _W_CA_QKV:_W_CA_QKV + 3 * C].astype(f32)
    ca_wproj = w_ref[:, _W_CA_PROJ:_W_CA_PROJ + C].astype(f32)
    mlp_w1 = w_ref[:, _W_MLP_W1:_W_MLP_W1 + MLP_HIDDEN].astype(f32)
    mlp_w2 = w2_ref[...].astype(f32)                       # (4C, C), natural MXU layout

    # ---- f32 constant slab: LN params, biases, precomputed masks ----
    ln1_g, ln1_b = c_ref[0:1, 0:C], c_ref[1:2, 0:C]
    ln2_g, ln2_b = c_ref[2:3, 0:C], c_ref[3:4, 0:C]
    ln3_g, ln3_b = c_ref[4:5, 0:C], c_ref[5:6, 0:C]
    sa_bqkv = c_ref[6:7, 0:3 * C]
    sa_bproj = c_ref[7:8, 0:C]
    ca_bqkv = c_ref[8:9, 0:3 * C]                          # [bq | bkv]
    ca_bproj = c_ref[9:10, 0:C]
    mlp_b1 = c_ref[10:11, 0:MLP_HIDDEN]
    mlp_b2 = c_ref[11:12, 0:C]
    head_mask = c_ref[_NP_ROWS:_NP_ROWS + HT, 0:C]                     # (HT, C) 0/1
    causal_bias = c_ref[_NP_ROWS + HT:_NP_ROWS + 2 * HT, 0:T]          # (HT, T) 0/-1e30

    scale = 1.0 / (HEAD_DIM ** 0.5)

    def layernorm(h, g, b):
        mu = jnp.mean(h, axis=-1, keepdims=True)
        var = jnp.mean((h - mu) ** 2, axis=-1, keepdims=True)
        return (h - mu) * jax.lax.rsqrt(var + LN_EPS) * g + b

    def fused_mha(q, k, v, attn_bias):
        # Heads stacked on the sublane axis: ONE score matmul + ONE PV matmul for all
        # N_HEAD heads of this batch element.  q: (T, C); k, v: (Tk, C).
        q_stack = jnp.broadcast_to(q * scale, (N_HEAD, T, C)).reshape(HT, C) * head_mask
        s = jax.lax.dot_general(q_stack, k, (((1,), (1,)), ((), ())),
                                preferred_element_type=f32)            # (HT, Tk)
        if attn_bias is not None:
            s = s + attn_bias                                          # additive mask
        m = jnp.max(s, axis=-1, keepdims=True)
        p = jnp.exp(s - m)
        p = p / jnp.sum(p, axis=-1, keepdims=True)                     # exact softmax
        o = jnp.dot(p, v, preferred_element_type=f32) * head_mask      # (HT, C)
        out = o[0:T]
        for h in range(1, N_HEAD):
            out = out + o[h * T:(h + 1) * T]                           # fold heads back
        return out                                                     # (T, C)

    x = xenc_ref[0:T, :].astype(f32)          # decoder tokens of this batch element
    enc = xenc_ref[T:T + S, :].astype(f32)    # encoder output of this batch element

    # ---- x = norm_1(x); x = x + dropout(self_attention(x)) ----
    x = layernorm(x, ln1_g, ln1_b)
    qkv = jnp.dot(x, sa_wqkv, preferred_element_type=f32) + sa_bqkv
    attn = fused_mha(qkv[:, 0:C], qkv[:, C:2 * C], qkv[:, 2 * C:3 * C], causal_bias)
    x = x + jnp.dot(attn, sa_wproj, preferred_element_type=f32) + sa_bproj

    # ---- x = norm_2(x); x = x + dropout(cross_attention(x, enc)) ----
    x = layernorm(x, ln2_g, ln2_b)
    # fused q / kv projections: one MXU push over vstack(x, enc) with [Wq | Wkv]
    qkv_c = jnp.dot(jnp.concatenate([x, enc], axis=0), ca_wqkv,
                    preferred_element_type=f32) + ca_bqkv              # (T+S, 3C)
    attn = fused_mha(qkv_c[0:T, 0:C],
                     qkv_c[T:T + S, C:2 * C],
                     qkv_c[T:T + S, 2 * C:3 * C],
                     None)                                             # no mask needed
    x = x + jnp.dot(attn, ca_wproj, preferred_element_type=f32) + ca_bproj

    # ---- x = norm_3(x); x = x + dropout(mlp(x)) ----
    x = layernorm(x, ln3_g, ln3_b)
    h = jnp.dot(x, mlp_w1, preferred_element_type=f32) + mlp_b1
    h = jax.nn.gelu(h, approximate=True)
    x = x + jnp.dot(h, mlp_w2, preferred_element_type=f32) + mlp_b2

    out_ref[...] = x.astype(out_ref.dtype)


# ---------------- parameter packing (done ONCE at init, not per call) ----------------
def pack_params(params, t_dec):
    C = N_EMBD
    T = t_dec
    HT = N_HEAD * T

    # bf16 weight slab: each weight starts at a 128-lane boundary -> one small DMA.
    w_blocks = [
        params["sa_wqkv"],                                                  # (C, 3C)
        params["sa_wproj"],                                                 # (C, C)
        jnp.concatenate([params["ca_wq"], params["ca_wkv"]], axis=1),       # (C, 3C)
        params["ca_wproj"],                                                 # (C, C)
        params["mlp_w1"],                                                   # (C, 4C)
    ]
    w_slab = jnp.concatenate(
        [jnp.pad(b, ((0, 0), (0, 128 - b.shape[1]))) for b in w_blocks],
        axis=1).astype(jnp.bfloat16)                                        # (C, 640)
    w2 = params["mlp_w2"].astype(jnp.bfloat16)                              # (4C, C)

    # f32 constant slab: 12 LN/bias rows (padded to 16), then precomputed masks.
    rows = [
        params["ln1_g"][0], params["ln1_b"][0],
        params["ln2_g"][0], params["ln2_b"][0],
        params["ln3_g"][0], params["ln3_b"][0],
        params["sa_bqkv"][0], params["sa_bproj"][0],
        jnp.concatenate([params["ca_bq"][0], params["ca_bkv"][0]]),
        params["ca_bproj"][0],
        params["mlp_b1"][0], params["mlp_b2"][0],
    ]
    p_rows = jnp.stack([jnp.pad(r, (0, 128 - r.shape[0])) for r in rows])
    p_rows = jnp.pad(p_rows, ((0, _NP_ROWS - p_rows.shape[0]), (0, 0)))     # (16, 128)

    # head-lane mask for the head-stacked (HT, C) layout: row block h keeps head-h lanes
    r_head = jnp.arange(HT)[:, None] // T
    c_head = jnp.arange(C)[None, :] // HEAD_DIM
    head_mask = (r_head == c_head).astype(jnp.float32)                      # (HT, C)

    # additive causal bias (shared by all heads): 0 where key <= query, -1e30 otherwise
    qpos = jnp.arange(HT)[:, None] % T
    kpos = jnp.arange(T)[None, :]
    causal_bias = jnp.where(qpos >= kpos, 0.0, NEG_INF).astype(jnp.float32)  # (HT, T)

    c_slab = jnp.concatenate([
        p_rows,
        jnp.pad(head_mask, ((0, 0), (0, 128 - C))),
        jnp.pad(causal_bias, ((0, 0), (0, 128 - T))),
    ], axis=0)                                                    # (16 + 2*HT, 128)
    return w_slab, w2, c_slab


# ---------------- wrapper ----------------
def decoder_layer(x, enc, packed):
    w_slab, w2, c_slab = packed
    B, T, C = x.shape
    S = enc.shape[1]
    assert C == N_EMBD and enc.shape[2] == C

    # one activation slab -> one activation DMA per grid step
    xenc = jnp.concatenate([x, enc], axis=1)                      # (B, T+S, C)

    kernel = functools.partial(_decoder_layer_kernel, t_dec=T, t_enc=S)
    out = pl.pallas_call(
        kernel,
        out_shape=jax.ShapeDtypeStruct((B, T, C), x.dtype),
        grid=(B,),                                                # one step per batch
        in_specs=[
            pl.BlockSpec((None, T + S, C), lambda b: (b, 0, 0)),  # per-batch activations
            pl.BlockSpec(w_slab.shape, lambda b: (0, 0)),         # constant: fetched once
            pl.BlockSpec(c_slab.shape, lambda b: (0, 0)),         # constant: fetched once
            pl.BlockSpec(w2.shape, lambda b: (0, 0)),             # constant: fetched once
        ],
        out_specs=pl.BlockSpec((None, T, C), lambda b: (b, 0, 0)),
        compiler_params=pltpu.CompilerParams(
            dimension_semantics=(pltpu.PARALLEL,),                # shard steps on v7x's 2 TCs
            vmem_limit_bytes=32 * 1024 * 1024),                   # explicit (v7x-safe) cap
    )(xenc, w_slab, c_slab, w2)
    return out.reshape(B, T, C)


# ---------------- pure-JAX reference (for sanity check) ----------------
def decoder_layer_ref(x, enc, p):
    def ln(h, g, b):
        mu = jnp.mean(h, axis=-1, keepdims=True)
        var = jnp.mean((h - mu) ** 2, axis=-1, keepdims=True)
        return (h - mu) / jnp.sqrt(var + LN_EPS) * g[0] + b[0]

    def mha(q, k, v, causal):
        B, Tq, _ = q.shape
        Tk = k.shape[1]
        qh = q.reshape(B, Tq, N_HEAD, HEAD_DIM).transpose(0, 2, 1, 3)
        kh = k.reshape(B, Tk, N_HEAD, HEAD_DIM).transpose(0, 2, 1, 3)
        vh = v.reshape(B, Tk, N_HEAD, HEAD_DIM).transpose(0, 2, 1, 3)
        s = jnp.einsum("bhqd,bhkd->bhqk", qh, kh) / jnp.sqrt(jnp.float32(HEAD_DIM))
        if causal:
            mask = jnp.tril(jnp.ones((Tq, Tk), dtype=bool))
            s = jnp.where(mask, s, NEG_INF)
        pr = jax.nn.softmax(s, axis=-1)
        o = jnp.einsum("bhqk,bhkd->bhqd", pr, vh)
        return o.transpose(0, 2, 1, 3).reshape(B, Tq, N_EMBD)

    x = ln(x, p["ln1_g"], p["ln1_b"])
    qkv = x @ p["sa_wqkv"] + p["sa_bqkv"][0]
    q, k, v = jnp.split(qkv, 3, axis=-1)
    x = x + (mha(q, k, v, True) @ p["sa_wproj"] + p["sa_bproj"][0])

    x = ln(x, p["ln2_g"], p["ln2_b"])
    q = x @ p["ca_wq"] + p["ca_bq"][0]
    kv = enc @ p["ca_wkv"] + p["ca_bkv"][0]
    k, v = jnp.split(kv, 2, axis=-1)
    x = x + (mha(q, k, v, False) @ p["ca_wproj"] + p["ca_bproj"][0])

    x = ln(x, p["ln3_g"], p["ln3_b"])
    h = jax.nn.gelu(x @ p["mlp_w1"] + p["mlp_b1"][0], approximate=True)
    x = x + (h @ p["mlp_w2"] + p["mlp_b2"][0])
    return x


# ---------------- deterministic parameter init ----------------
def init_params(key):
    ks = jax.random.split(key, 12)
    s = 0.02
    C, H = N_EMBD, MLP_HIDDEN
    return {
        "ln1_g": jnp.ones((1, C), jnp.float32), "ln1_b": jnp.zeros((1, C), jnp.float32),
        "ln2_g": jnp.ones((1, C), jnp.float32), "ln2_b": jnp.zeros((1, C), jnp.float32),
        "ln3_g": jnp.ones((1, C), jnp.float32), "ln3_b": jnp.zeros((1, C), jnp.float32),
        "sa_wqkv": s * jax.random.normal(ks[0], (C, 3 * C), jnp.float32),
        "sa_bqkv": jnp.zeros((1, 3 * C), jnp.float32),
        "sa_wproj": s * jax.random.normal(ks[1], (C, C), jnp.float32),
        "sa_bproj": jnp.zeros((1, C), jnp.float32),
        "ca_wq": s * jax.random.normal(ks[2], (C, C), jnp.float32),
        "ca_bq": jnp.zeros((1, C), jnp.float32),
        "ca_wkv": s * jax.random.normal(ks[3], (C, 2 * C), jnp.float32),
        "ca_bkv": jnp.zeros((1, 2 * C), jnp.float32),
        "ca_wproj": s * jax.random.normal(ks[4], (C, C), jnp.float32),
        "ca_bproj": jnp.zeros((1, C), jnp.float32),
        "mlp_w1": s * jax.random.normal(ks[5], (C, H), jnp.float32),
        "mlp_b1": jnp.zeros((1, H), jnp.float32),
        "mlp_w2": s * jax.random.normal(ks[6], (H, C), jnp.float32),
        "mlp_b2": jnp.zeros((1, C), jnp.float32),
    }


if __name__ == "__main__":
    key = jax.random.PRNGKey(0)
    k_x, k_enc, k_p = jax.random.split(key, 3)

    B, T, S, C = 2, 8, 8, N_EMBD
    x = jax.random.normal(k_x, (B, T, C), jnp.float32)
    enc = jax.random.normal(k_enc, (B, S, C), jnp.float32)
    params = init_params(k_p)

    # The kernel ships its weight slab as bf16 (halves the weight DMA); round the
    # parameters through bf16 up-front so the f32 reference sees the same effective
    # values and the comparison only tests kernel logic, not quantization.
    params = jax.tree_util.tree_map(
        lambda a: a.astype(jnp.bfloat16).astype(jnp.float32), params)

    packed = pack_params(params, T)          # hoisted: packed once, reused every call
    layer = jax.jit(decoder_layer)

    out = layer(x, enc, packed)
    out = jax.block_until_ready(out)

    ref = decoder_layer_ref(x, enc, params)
    assert out.shape == (B, T, C)
    assert jnp.allclose(out, ref, atol=1e-3, rtol=1e-3), "mismatch vs reference"
    print("KERNEL_OK")
</pallas_src>

<mosaic_0001>
module attributes {stable_mosaic.version = 11 : i64} {
  func.func @_decoder_layer_kernel(%arg0: i32, %arg1: memref<1x16x32xf32, #tpu.memory_space<vmem>>, %arg2: memref<32x640xbf16, #tpu.memory_space<vmem>>, %arg3: memref<80x128xf32, #tpu.memory_space<vmem>>, %arg4: memref<128x32xbf16, #tpu.memory_space<vmem>>, %arg5: memref<1x8x32xf32, #tpu.memory_space<vmem>>) attributes {dimension_semantics = [#tpu.dimension_semantics<parallel>], iteration_bounds = array<i64: 2>, scalar_prefetch = 0 : i64, scratch_operands = 0 : i64, tpu.core_type = #tpu.core_type<tc>, window_params = [{transform_indices = @transform_0, window_bounds = array<i64: 1, 16, 32>}, {pipeline_mode = #tpu.pipeline_mode<synchronous>, transform_indices = @transform_1, window_bounds = array<i64: 32, 640>}, {pipeline_mode = #tpu.pipeline_mode<synchronous>, transform_indices = @transform_2, window_bounds = array<i64: 80, 128>}, {pipeline_mode = #tpu.pipeline_mode<synchronous>, transform_indices = @transform_3, window_bounds = array<i64: 128, 32>}, {transform_indices = @transform_4, window_bounds = array<i64: 1, 8, 32>}]} {
    %c0 = arith.constant 0 : index
    %c0_0 = arith.constant 0 : index
    %0 = vector.load %arg2[%c0, %c0_0] : memref<32x640xbf16, #tpu.memory_space<vmem>>, vector<32x96xbf16>
    %1 = arith.extf %0 : vector<32x96xbf16> to vector<32x96xf32>
    %c0_1 = arith.constant 0 : index
    %c128 = arith.constant 128 : index
    %2 = vector.load %arg2[%c0_1, %c128] : memref<32x640xbf16, #tpu.memory_space<vmem>>, vector<32x32xbf16>
    %3 = arith.extf %2 : vector<32x32xbf16> to vector<32x32xf32>
    %c0_2 = arith.constant 0 : index
    %c256 = arith.constant 256 : index
    %4 = vector.load %arg2[%c0_2, %c256] : memref<32x640xbf16, #tpu.memory_space<vmem>>, vector<32x96xbf16>
    %5 = arith.extf %4 : vector<32x96xbf16> to vector<32x96xf32>
    %c0_3 = arith.constant 0 : index
    %c384 = arith.constant 384 : index
    %6 = vector.load %arg2[%c0_3, %c384] : memref<32x640xbf16, #tpu.memory_space<vmem>>, vector<32x32xbf16>
    %7 = arith.extf %6 : vector<32x32xbf16> to vector<32x32xf32>
    %c0_4 = arith.constant 0 : index
    %c512 = arith.constant 512 : index
    %8 = vector.load %arg2[%c0_4, %c512] : memref<32x640xbf16, #tpu.memory_space<vmem>>, vector<32x128xbf16>
    %9 = arith.extf %8 : vector<32x128xbf16> to vector<32x128xf32>
    %c0_5 = arith.constant 0 : index
    %c0_6 = arith.constant 0 : index
    %10 = vector.load %arg4[%c0_5, %c0_6] : memref<128x32xbf16, #tpu.memory_space<vmem>>, vector<128x32xbf16>
    %11 = arith.extf %10 : vector<128x32xbf16> to vector<128x32xf32>
    %c0_7 = arith.constant 0 : index
    %c0_8 = arith.constant 0 : index
    %12 = vector.load %arg3[%c0_7, %c0_8] : memref<80x128xf32, #tpu.memory_space<vmem>>, vector<1x32xf32>
    %c1 = arith.constant 1 : index
    %c0_9 = arith.constant 0 : index
    %13 = vector.load %arg3[%c1, %c0_9] : memref<80x128xf32, #tpu.memory_space<vmem>>, vector<1x32xf32>
    %c2 = arith.constant 2 : index
    %c0_10 = arith.constant 0 : index
    %14 = vector.load %arg3[%c2, %c0_10] : memref<80x128xf32, #tpu.memory_space<vmem>>, vector<1x32xf32>
    %c3 = arith.constant 3 : index
    %c0_11 = arith.constant 0 : index
    %15 = vector.load %arg3[%c3, %c0_11] : memref<80x128xf32, #tpu.memory_space<vmem>>, vector<1x32xf32>
    %c4 = arith.constant 4 : index
    %c0_12 = arith.constant 0 : index
    %16 = vector.load %arg3[%c4, %c0_12] : memref<80x128xf32, #tpu.memory_space<vmem>>, vector<1x32xf32>
    %c5 = arith.constant 5 : index
    %c0_13 = arith.constant 0 : index
    %17 = vector.load %arg3[%c5, %c0_13] : memref<80x128xf32, #tpu.memory_space<vmem>>, vector<1x32xf32>
    %c6 = arith.constant 6 : index
    %c0_14 = arith.constant 0 : index
    %18 = vector.load %arg3[%c6, %c0_14] : memref<80x128xf32, #tpu.memory_space<vmem>>, vector<1x96xf32>
    %c7 = arith.constant 7 : index
    %c0_15 = arith.constant 0 : index
    %19 = vector.load %arg3[%c7, %c0_15] : memref<80x128xf32, #tpu.memory_space<vmem>>, vector<1x32xf32>
    %c8 = arith.constant 8 : index
    %c0_16 = arith.constant 0 : index
    %20 = vector.load %arg3[%c8, %c0_16] : memref<80x128xf32, #tpu.memory_space<vmem>>, vector<1x96xf32>
    %c9 = arith.constant 9 : index
    %c0_17 = arith.constant 0 : index
    %21 = vector.load %arg3[%c9, %c0_17] : memref<80x128xf32, #tpu.memory_space<vmem>>, vector<1x32xf32>
    %c10 = arith.constant 10 : index
    %c0_18 = arith.constant 0 : index
    %22 = vector.load %arg3[%c10, %c0_18] : memref<80x128xf32, #tpu.memory_space<vmem>>, vector<1x128xf32>
    %c11 = arith.constant 11 : index
    %c0_19 = arith.constant 0 : index
    %23 = vector.load %arg3[%c11, %c0_19] : memref<80x128xf32, #tpu.memory_space<vmem>>, vector<1x32xf32>
    %c16 = arith.constant 16 : index
    %c0_20 = arith.constant 0 : index
    %24 = vector.load %arg3[%c16, %c0_20] : memref<80x128xf32, #tpu.memory_space<vmem>>, vector<32x32xf32>
    %c48 = arith.constant 48 : index
    %c0_21 = arith.constant 0 : index
    %25 = vector.load %arg3[%c48, %c0_21] : memref<80x128xf32, #tpu.memory_space<vmem>>, vector<32x8xf32>
    %c0_22 = arith.constant 0 : index
    %c0_23 = arith.constant 0 : index
    %c0_24 = arith.constant 0 : index
    %26 = vector.load %arg1[%c0_22, %c0_23, %c0_24] : memref<1x16x32xf32, #tpu.memory_space<vmem>>, vector<1x8x32xf32>
    %27 = vector.shape_cast %26 : vector<1x8x32xf32> to vector<8x32xf32>
    %c0_25 = arith.constant 0 : index
    %c8_26 = arith.constant 8 : index
    %c0_27 = arith.constant 0 : index
    %28 = vector.load %arg1[%c0_25, %c8_26, %c0_27] : memref<1x16x32xf32, #tpu.memory_space<vmem>>, vector<1x8x32xf32>
    %29 = vector.shape_cast %28 : vector<1x8x32xf32> to vector<8x32xf32>
    %cst = arith.constant dense<0.000000e+00> : vector<8xf32>
    %30 = vector.multi_reduction <add>, %27, %cst [1] : vector<8x32xf32> to vector<8xf32>
    %31 = vector.shape_cast %30 : vector<8xf32> to vector<8x1xf32>
    %cst_28 = arith.constant 3.200000e+01 : f32
    %32 = vector.broadcast %cst_28 : f32 to vector<8x1xf32>
    %33 = arith.divf %31, %32 : vector<8x1xf32>
    %34 = vector.broadcast %33 : vector<8x1xf32> to vector<8x32xf32>
    %35 = arith.subf %27, %34 : vector<8x32xf32>
    %36 = arith.mulf %35, %35 : vector<8x32xf32>
    %cst_29 = arith.constant dense<0.000000e+00> : vector<8xf32>
    %37 = vector.multi_reduction <add>, %36, %cst_29 [1] : vector<8x32xf32> to vector<8xf32>
    %38 = vector.shape_cast %37 : vector<8xf32> to vector<8x1xf32>
    %cst_30 = arith.constant 3.200000e+01 : f32
    %39 = vector.broadcast %cst_30 : f32 to vector<8x1xf32>
    %40 = arith.divf %38, %39 : vector<8x1xf32>
    %41 = vector.broadcast %33 : vector<8x1xf32> to vector<8x32xf32>
    %42 = arith.subf %27, %41 : vector<8x32xf32>
    %cst_31 = arith.constant 9.99999974E-6 : f32
    %43 = vector.broadcast %cst_31 : f32 to vector<8x1xf32>
    %44 = arith.addf %40, %43 : vector<8x1xf32>
    %45 = math.rsqrt %44 : vector<8x1xf32>
    %46 = vector.broadcast %45 : vector<8x1xf32> to vector<8x32xf32>
    %47 = arith.mulf %42, %46 : vector<8x32xf32>
    %48 = vector.broadcast %12 : vector<1x32xf32> to vector<8x32xf32>
    %49 = arith.mulf %47, %48 : vector<8x32xf32>
    %50 = vector.broadcast %13 : vector<1x32xf32> to vector<8x32xf32>
    %51 = arith.addf %49, %50 : vector<8x32xf32>
    %cst_32 = arith.constant dense<0.000000e+00> : vector<8x96xf32>
    %52 = tpu.matmul %51, %1, %cst_32 {dimension_numbers = #tpu.dot_dimension_numbers<[1], [0], [0], [1], [0, 0, 1, 1], [], []>} : vector<8x32xf32>, vector<32x96xf32>, vector<8x96xf32> -> vector<8x96xf32>
    %53 = vector.broadcast %18 : vector<1x96xf32> to vector<8x96xf32>
    %54 = arith.addf %52, %53 : vector<8x96xf32>
    %55 = vector.extract_strided_slice %54 {offsets = [0, 0], sizes = [8, 32], strides = [1, 1]} : vector<8x96xf32> to vector<8x32xf32>
    %56 = vector.extract_strided_slice %54 {offsets = [0, 32], sizes = [8, 32], strides = [1, 1]} : vector<8x96xf32> to vector<8x32xf32>
    %57 = vector.extract_strided_slice %54 {offsets = [0, 64], sizes = [8, 32], strides = [1, 1]} : vector<8x96xf32> to vector<8x32xf32>
    %cst_33 = arith.constant 0.353553385 : f32
    %58 = vector.broadcast %cst_33 : f32 to vector<8x32xf32>
    %59 = arith.mulf %55, %58 : vector<8x32xf32>
    %60 = vector.shape_cast %59 : vector<8x32xf32> to vector<1x8x32xf32>
    %61 = vector.broadcast %60 : vector<1x8x32xf32> to vector<4x8x32xf32>
    %62 = vector.shape_cast %61 : vector<4x8x32xf32> to vector<32x32xf32>
    %63 = arith.mulf %62, %24 : vector<32x32xf32>
    %cst_34 = arith.constant dense<0.000000e+00> : vector<32x8xf32>
    %64 = tpu.matmul %63, %56, %cst_34 {dimension_numbers = #tpu.dot_dimension_numbers<[1], [1], [0], [0], [0, 0, 1, 0], [], []>} : vector<32x32xf32>, vector<8x32xf32>, vector<32x8xf32> -> vector<32x8xf32>
    %65 = arith.addf %64, %25 : vector<32x8xf32>
    %cst_35 = arith.constant dense<0xFF800000> : vector<32xf32>
    %66 = vector.multi_reduction <maximumf>, %65, %cst_35 [1] : vector<32x8xf32> to vector<32xf32>
    %67 = vector.shape_cast %66 : vector<32xf32> to vector<32x1xf32>
    %68 = vector.broadcast %67 : vector<32x1xf32> to vector<32x8xf32>
    %69 = arith.subf %65, %68 : vector<32x8xf32>
    %70 = math.exp %69 : vector<32x8xf32>
    %cst_36 = arith.constant dense<0.000000e+00> : vector<32xf32>
    %71 = vector.multi_reduction <add>, %70, %cst_36 [1] : vector<32x8xf32> to vector<32xf32>
    %72 = vector.shape_cast %71 : vector<32xf32> to vector<32x1xf32>
    %73 = vector.broadcast %72 : vector<32x1xf32> to vector<32x8xf32>
    %74 = arith.divf %70, %73 : vector<32x8xf32>
    %cst_37 = arith.constant dense<0.000000e+00> : vector<32x32xf32>
    %75 = tpu.matmul %74, %57, %cst_37 {dimension_numbers = #tpu.dot_dimension_numbers<[1], [0], [0], [1], [0, 0, 1, 1], [], []>} : vector<32x8xf32>, vector<8x32xf32>, vector<32x32xf32> -> vector<32x32xf32>
    %76 = arith.mulf %75, %24 : vector<32x32xf32>
    %77 = vector.extract_strided_slice %76 {offsets = [0, 0], sizes = [8, 32], strides = [1, 1]} : vector<32x32xf32> to vector<8x32xf32>
    %78 = vector.extract_strided_slice %76 {offsets = [8, 0], sizes = [8, 32], strides = [1, 1]} : vector<32x32xf32> to vector<8x32xf32>
    %79 = arith.addf %77, %78 : vector<8x32xf32>
    %80 = vector.extract_strided_slice %76 {offsets = [16, 0], sizes = [8, 32], strides = [1, 1]} : vector<32x32xf32> to vector<8x32xf32>
    %81 = arith.addf %79, %80 : vector<8x32xf32>
    %82 = vector.extract_strided_slice %76 {offsets = [24, 0], sizes = [8, 32], strides = [1, 1]} : vector<32x32xf32> to vector<8x32xf32>
    %83 = arith.addf %81, %82 : vector<8x32xf32>
    %cst_38 = arith.constant dense<0.000000e+00> : vector<8x32xf32>
    %84 = tpu.matmul %83, %3, %cst_38 {dimension_numbers = #tpu.dot_dimension_numbers<[1], [0], [0], [1], [0, 0, 1, 1], [], []>} : vector<8x32xf32>, vector<32x32xf32>, vector<8x32xf32> -> vector<8x32xf32>
    %85 = arith.addf %51, %84 : vector<8x32xf32>
    %86 = vector.broadcast %19 : vector<1x32xf32> to vector<8x32xf32>
    %87 = arith.addf %85, %86 : vector<8x32xf32>
    %cst_39 = arith.constant dense<0.000000e+00> : vector<8xf32>
    %88 = vector.multi_reduction <add>, %87, %cst_39 [1] : vector<8x32xf32> to vector<8xf32>
    %89 = vector.shape_cast %88 : vector<8xf32> to vector<8x1xf32>
    %cst_40 = arith.constant 3.200000e+01 : f32
    %90 = vector.broadcast %cst_40 : f32 to vector<8x1xf32>
    %91 = arith.divf %89, %90 : vector<8x1xf32>
    %92 = vector.broadcast %91 : vector<8x1xf32> to vector<8x32xf32>
    %93 = arith.subf %87, %92 : vector<8x32xf32>
    %94 = arith.mulf %93, %93 : vector<8x32xf32>
    %cst_41 = arith.constant dense<0.000000e+00> : vector<8xf32>
    %95 = vector.multi_reduction <add>, %94, %cst_41 [1] : vector<8x32xf32> to vector<8xf32>
    %96 = vector.shape_cast %95 : vector<8xf32> to vector<8x1xf32>
    %cst_42 = arith.constant 3.200000e+01 : f32
    %97 = vector.broadcast %cst_42 : f32 to vector<8x1xf32>
    %98 = arith.divf %96, %97 : vector<8x1xf32>
    %99 = vector.broadcast %91 : vector<8x1xf32> to vector<8x32xf32>
    %100 = arith.subf %87, %99 : vector<8x32xf32>
    %cst_43 = arith.constant 9.99999974E-6 : f32
    %101 = vector.broadcast %cst_43 : f32 to vector<8x1xf32>
    %102 = arith.addf %98, %101 : vector<8x1xf32>
    %103 = math.rsqrt %102 : vector<8x1xf32>
    %104 = vector.broadcast %103 : vector<8x1xf32> to vector<8x32xf32>
    %105 = arith.mulf %100, %104 : vector<8x32xf32>
    %106 = vector.broadcast %14 : vector<1x32xf32> to vector<8x32xf32>
    %107 = arith.mulf %105, %106 : vector<8x32xf32>
    %108 = vector.broadcast %15 : vector<1x32xf32> to vector<8x32xf32>
    %109 = arith.addf %107, %108 : vector<8x32xf32>
    %110 = tpu.concatenate %109, %29 in 0 : vector<8x32xf32>, vector<8x32xf32> -> vector<16x32xf32>
    %cst_44 = arith.constant dense<0.000000e+00> : vector<16x96xf32>
    %111 = tpu.matmul %110, %5, %cst_44 {dimension_numbers = #tpu.dot_dimension_numbers<[1], [0], [0], [1], [0, 0, 1, 1], [], []>} : vector<16x32xf32>, vector<32x96xf32>, vector<16x96xf32> -> vector<16x96xf32>
    %112 = vector.broadcast %20 : vector<1x96xf32> to vector<16x96xf32>
    %113 = arith.addf %111, %112 : vector<16x96xf32>
    %114 = vector.extract_strided_slice %113 {offsets = [0, 0], sizes = [8, 32], strides = [1, 1]} : vector<16x96xf32> to vector<8x32xf32>
    %115 = vector.extract_strided_slice %113 {offsets = [8, 32], sizes = [8, 32], strides = [1, 1]} : vector<16x96xf32> to vector<8x32xf32>
    %116 = vector.extract_strided_slice %113 {offsets = [8, 64], sizes = [8, 32], strides = [1, 1]} : vector<16x96xf32> to vector<8x32xf32>
    %cst_45 = arith.constant 0.353553385 : f32
    %117 = vector.broadcast %cst_45 : f32 to vector<8x32xf32>
    %118 = arith.mulf %114, %117 : vector<8x32xf32>
    %119 = vector.shape_cast %118 : vector<8x32xf32> to vector<1x8x32xf32>
    %120 = vector.broadcast %119 : vector<1x8x32xf32> to vector<4x8x32xf32>
    %121 = vector.shape_cast %120 : vector<4x8x32xf32> to vector<32x32xf32>
    %122 = arith.mulf %121, %24 : vector<32x32xf32>
    %cst_46 = arith.constant dense<0.000000e+00> : vector<32x8xf32>
    %123 = tpu.matmul %122, %115, %cst_46 {dimension_numbers = #tpu.dot_dimension_numbers<[1], [1], [0], [0], [0, 0, 1, 0], [], []>} : vector<32x32xf32>, vector<8x32xf32>, vector<32x8xf32> -> vector<32x8xf32>
    %cst_47 = arith.constant dense<0xFF800000> : vector<32xf32>
    %124 = vector.multi_reduction <maximumf>, %123, %cst_47 [1] : vector<32x8xf32> to vector<32xf32>
    %125 = vector.shape_cast %124 : vector<32xf32> to vector<32x1xf32>
    %126 = vector.broadcast %125 : vector<32x1xf32> to vector<32x8xf32>
    %127 = arith.subf %123, %126 : vector<32x8xf32>
    %128 = math.exp %127 : vector<32x8xf32>
    %cst_48 = arith.constant dense<0.000000e+00> : vector<32xf32>
    %129 = vector.multi_reduction <add>, %128, %cst_48 [1] : vector<32x8xf32> to vector<32xf32>
    %130 = vector.shape_cast %129 : vector<32xf32> to vector<32x1xf32>
    %131 = vector.broadcast %130 : vector<32x1xf32> to vector<32x8xf32>
    %132 = arith.divf %128, %131 : vector<32x8xf32>
    %cst_49 = arith.constant dense<0.000000e+00> : vector<32x32xf32>
    %133 = tpu.matmul %132, %116, %cst_49 {dimension_numbers = #tpu.dot_dimension_numbers<[1], [0], [0], [1], [0, 0, 1, 1], [], []>} : vector<32x8xf32>, vector<8x32xf32>, vector<32x32xf32> -> vector<32x32xf32>
    %134 = arith.mulf %133, %24 : vector<32x32xf32>
    %135 = vector.extract_strided_slice %134 {offsets = [0, 0], sizes = [8, 32], strides = [1, 1]} : vector<32x32xf32> to vector<8x32xf32>
    %136 = vector.extract_strided_slice %134 {offsets = [8, 0], sizes = [8, 32], strides = [1, 1]} : vector<32x32xf32> to vector<8x32xf32>
    %137 = arith.addf %135, %136 : vector<8x32xf32>
    %138 = vector.extract_strided_slice %134 {offsets = [16, 0], sizes = [8, 32], strides = [1, 1]} : vector<32x32xf32> to vector<8x32xf32>
    %139 = arith.addf %137, %138 : vector<8x32xf32>
    %140 = vector.extract_strided_slice %134 {offsets = [24, 0], sizes = [8, 32], strides = [1, 1]} : vector<32x32xf32> to vector<8x32xf32>
    %141 = arith.addf %139, %140 : vector<8x32xf32>
    %cst_50 = arith.constant dense<0.000000e+00> : vector<8x32xf32>
    %142 = tpu.matmul %141, %7, %cst_50 {dimension_numbers = #tpu.dot_dimension_numbers<[1], [0], [0], [1], [0, 0, 1, 1], [], []>} : vector<8x32xf32>, vector<32x32xf32>, vector<8x32xf32> -> vector<8x32xf32>
    %143 = arith.addf %109, %142 : vector<8x32xf32>
    %144 = vector.broadcast %21 : vector<1x32xf32> to vector<8x32xf32>
    %145 = arith.addf %143, %144 : vector<8x32xf32>
    %cst_51 = arith.constant dense<0.000000e+00> : vector<8xf32>
    %146 = vector.multi_reduction <add>, %145, %cst_51 [1] : vector<8x32xf32> to vector<8xf32>
    %147 = vector.shape_cast %146 : vector<8xf32> to vector<8x1xf32>
    %cst_52 = arith.constant 3.200000e+01 : f32
    %148 = vector.broadcast %cst_52 : f32 to vector<8x1xf32>
    %149 = arith.divf %147, %148 : vector<8x1xf32>
    %150 = vector.broadcast %149 : vector<8x1xf32> to vector<8x32xf32>
    %151 = arith.subf %145, %150 : vector<8x32xf32>
    %152 = arith.mulf %151, %151 : vector<8x32xf32>
    %cst_53 = arith.constant dense<0.000000e+00> : vector<8xf32>
    %153 = vector.multi_reduction <add>, %152, %cst_53 [1] : vector<8x32xf32> to vector<8xf32>
    %154 = vector.shape_cast %153 : vector<8xf32> to vector<8x1xf32>
    %cst_54 = arith.constant 3.200000e+01 : f32
    %155 = vector.broadcast %cst_54 : f32 to vector<8x1xf32>
    %156 = arith.divf %154, %155 : vector<8x1xf32>
    %157 = vector.broadcast %149 : vector<8x1xf32> to vector<8x32xf32>
    %158 = arith.subf %145, %157 : vector<8x32xf32>
    %cst_55 = arith.constant 9.99999974E-6 : f32
    %159 = vector.broadcast %cst_55 : f32 to vector<8x1xf32>
    %160 = arith.addf %156, %159 : vector<8x1xf32>
    %161 = math.rsqrt %160 : vector<8x1xf32>
    %162 = vector.broadcast %161 : vector<8x1xf32> to vector<8x32xf32>
    %163 = arith.mulf %158, %162 : vector<8x32xf32>
    %164 = vector.broadcast %16 : vector<1x32xf32> to vector<8x32xf32>
    %165 = arith.mulf %163, %164 : vector<8x32xf32>
    %166 = vector.broadcast %17 : vector<1x32xf32> to vector<8x32xf32>
    %167 = arith.addf %165, %166 : vector<8x32xf32>
    %cst_56 = arith.constant dense<0.000000e+00> : vector<8x128xf32>
    %168 = tpu.matmul %167, %9, %cst_56 {dimension_numbers = #tpu.dot_dimension_numbers<[1], [0], [0], [1], [0, 0, 1, 1], [], []>} : vector<8x32xf32>, vector<32x128xf32>, vector<8x128xf32> -> vector<8x128xf32>
    %169 = vector.broadcast %22 : vector<1x128xf32> to vector<8x128xf32>
    %170 = arith.addf %168, %169 : vector<8x128xf32>
    %171 = arith.mulf %170, %170 : vector<8x128xf32>
    %172 = arith.mulf %170, %171 : vector<8x128xf32>
    %cst_57 = arith.constant 4.471500e-02 : f32
    %173 = vector.broadcast %cst_57 : f32 to vector<8x128xf32>
    %174 = arith.mulf %173, %172 : vector<8x128xf32>
    %175 = arith.addf %170, %174 : vector<8x128xf32>
    %cst_58 = arith.constant 0.797884583 : f32
    %176 = vector.broadcast %cst_58 : f32 to vector<8x128xf32>
    %177 = arith.mulf %176, %175 : vector<8x128xf32>
    %178 = math.tanh %177 : vector<8x128xf32>
    %cst_59 = arith.constant 1.000000e+00 : f32
    %179 = vector.broadcast %cst_59 : f32 to vector<8x128xf32>
    %180 = arith.addf %179, %178 : vector<8x128xf32>
    %cst_60 = arith.constant 5.000000e-01 : f32
    %181 = vector.broadcast %cst_60 : f32 to vector<8x128xf32>
    %182 = arith.mulf %181, %180 : vector<8x128xf32>
    %183 = arith.mulf %170, %182 : vector<8x128xf32>
    %cst_61 = arith.constant dense<0.000000e+00> : vector<8x32xf32>
    %184 = tpu.matmul %183, %11, %cst_61 {dimension_numbers = #tpu.dot_dimension_numbers<[1], [0], [0], [1], [0, 0, 1, 1], [], []>} : vector<8x128xf32>, vector<128x32xf32>, vector<8x32xf32> -> vector<8x32xf32>
    %185 = arith.addf %167, %184 : vector<8x32xf32>
    %186 = vector.broadcast %23 : vector<1x32xf32> to vector<8x32xf32>
    %187 = arith.addf %185, %186 : vector<8x32xf32>
    %c0_62 = arith.constant 0 : index
    %c0_63 = arith.constant 0 : index
    %c0_64 = arith.constant 0 : index
    %188 = vector.load %arg5[%c0_62, %c0_63, %c0_64] : memref<1x8x32xf32, #tpu.memory_space<vmem>>, vector<1x8x32xf32>
    %189 = vector.shape_cast %188 : vector<1x8x32xf32> to vector<8x32xf32>
    %190 = vector.shape_cast %187 : vector<8x32xf32> to vector<1x8x32xf32>
    tpu.vector_store %arg5[%c0_62, %c0_63, %c0_64], %190 {strides = array<i32>} : memref<1x8x32xf32, #tpu.memory_space<vmem>>, vector<1x8x32xf32>,
    return
  }
  func.func @transform_0(%arg0: i32) -> (i32, i32, i32) {
    %c0_i32 = arith.constant 0 : i32
    %c0_i32_0 = arith.constant 0 : i32
    %c0_i32_1 = arith.constant 0 : i32
    return %arg0, %c0_i32, %c0_i32_0 : i32, i32, i32
  }
  func.func @transform_1(%arg0: i32) -> (i32, i32) {
    %c0_i32 = arith.constant 0 : i32
    %c0_i32_0 = arith.constant 0 : i32
    %c0_i32_1 = arith.constant 0 : i32
    return %c0_i32, %c0_i32_0 : i32, i32
  }
  func.func @transform_2(%arg0: i32) -> (i32, i32) {
    %c0_i32 = arith.constant 0 : i32
    %c0_i32_0 = arith.constant 0 : i32
    %c0_i32_1 = arith.constant 0 : i32
    return %c0_i32, %c0_i32_0 : i32, i32
  }
  func.func @transform_3(%arg0: i32) -> (i32, i32) {
    %c0_i32 = arith.constant 0 : i32
    %c0_i32_0 = arith.constant 0 : i32
    %c0_i32_1 = arith.constant 0 : i32
    return %c0_i32, %c0_i32_0 : i32, i32
  }
  func.func @transform_4(%arg0: i32) -> (i32, i32, i32) {
    %c0_i32 = arith.constant 0 : i32
    %c0_i32_0 = arith.constant 0 : i32
    %c0_i32_1 = arith.constant 0 : i32
    return %arg0, %c0_i32, %c0_i32_0 : i32, i32, i32
  }
}

</mosaic_0001>

<bundles_post_ra>
// kernel: decoder_layer.1
= control target key start
LH: loop header
LB: loop body
LE: loop exit
PB: predicated region body
PF: predicated region fallthrough
CT: control target
= control target key end

     0   :  { %9 = vsyncpa [#allocation3], 0  ;;  %s1666_s0 = inlined_call_operand.vmem [shape: f32[2,16,32], index: 0, kind: input, shape index: {}]   ;;  %s1667_s1 = inlined_call_operand.vmem [shape: bf16[32,640], index: 1, kind: input, shape index: {}]   ;;  %s1668_s2 = inlined_call_operand.hbm [shape: f32[80,128], index: 2, kind: input, shape index: {}]   ;;  %s1669_s3 = inlined_call_operand.vmem [shape: bf16[128,32], index: 3, kind: input, shape index: {}]   ;;  %s1670_s4 = inlined_call_operand.hbm [shape: f32[2,8,32], index: 4, kind: output, shape index: {}]  }
   0x1   :  { %10 = vsyncpa [#allocation4], 0 }
   0x2   :  { %12 = vsyncpa [#allocation4 + $0x1], 0  ;;  %s1359_s15 = smov 0   ;;  %s1361_s16 = smov 0  }
   0x3   :  { %s1363_s17 = smov 0   ;;  %s1365_s18 = smov 0  }
   0x4 LB: > { %s1380_s19 = sadd.s32 4294967295, %s1326_s18   ;;  %s1040_s20 = sadd.s32 4294967294, %s1326_s18   ;;  %s1326_s18 = sphi %s1365_s18, %s1676_s18   ;;  %s1322_s17 = sphi %s1363_s17, %s1675_s17   ;;  %s1318_s16 = sphi %s1361_s16, %s1674_s16   ;;  %s1314_s15 = sphi %s1359_s15, %s1673_s15  }
   0x5   : > { %s1384_s21 = sadd.s32 1, %s1326_s18   ;;  %s114_s22 = sadd.s32 1, %s1322_s17 }
   0x6   : > { %s111_s23 = ssub.s32 %s1326_s18, %s1384_s21  ;;  %p124_p0 = scmp.ne.s32.totalorder %s1322_s17, %s1318_s16 }
   0x7   : > { %p112_p1 = scmp.eq.s32.totalorder %s111_s23, 0  ;;  %p125_p2 = scmp.eq.s32.totalorder %s1380_s19, 1 }
   0x8   : > { %p130_p3 = scmp.ne.s32.totalorder %s1318_s16, %s1314_s15  ;;  %p131_p4 = scmp.eq.s32.totalorder %s1040_s20, 1 }
   0x9   : > { %s1395_s24 = scalar_select %p112_p1, %s1322_s17, %s114_s22  }
   0xa   : > { %p1397_p5 = por %p125_p2, %p124_p0  ;;  %p1401_p6 = por %p131_p4, %p130_p3 }
   0xb   : > { %p1041_p7 = scmp.ge.s32.totalorder %s1326_s18, 1  ;;  %p138_p8 = scmp.lt.s32.totalorder %s1326_s18, 3 }
   0xc   : > { %p1135_p9 = scmp.eq.s32.totalorder %s1380_s19, 0  ;;  %s152_s29 = sshll.u32 %s1668_s2, 4  ;;  %s153_s29 = int_to_ptr.hbm [resolvable:$true] %s152_s29 }
   0xd   : > { %p139_p10 = pnand %p1041_p7, %p138_p8  ;;  %s1328_s30 = smov [#allocation2]  }
   0xe   : > { %s154_s5 = sshll.u32 %s1328_s30, 4  ;;  %s1329_s6 = smov 128   ;;  %s155_s5 = int_to_ptr.vmem [resolvable:$true] %s154_s5 }
   0xf   : > { %p1127_p11 = pneg %p139_p10  ;;  %s1330_s7 = smov 8  }
  0x10   : > { %181 = sbr.rel (%p139_p10) target bundleno = 2890 (0xb4a), region = 36 }
  0x11   : > { %p1128_p12 = pnand %p1135_p9, %p1127_p11 }
  0x13   : > { %1130 = dma.hbm_to_vmem [thread:$0]  (!%p1128_p12), %s153_s29, 1280, %s155_s5, [#allocation3], %s1329_s6, %s1329_s6, %s1330_s7  }
  0x15   : > { %1305 = dma.done.wait (%p1135_p9), [#allocation3], 1280  }
  0x16   : > { %1307 = vsyncadd (%p1135_p9), [#allocation3], 4294966016  ;;  %p208_p13 = scmp.lt.s32.totalorder %s1380_s19, 1  ;;  %vm307_vm0 = vcmask 261120   ;;  %v1331_v2 = vmov 32.0   ;;  %v1433_v14 = vld [vmem:[%s1667_s1 + $0x3c] sm:$0xff]  }
  0x17   : > { %1188 = vrcp.f32 %v1331_v2  ;;  %v220_v15 = vunpack.c.l.bf16 %v1433_v14  ;;  %v1439_v16 = vld [vmem:[%s1667_s1 + $0x28] sm:$0xff]   ;;  %v1445_v18 = vld [vmem:[%s1667_s1 + $0x14] sm:$0xff]   ;;  %v1450_v19 = vld [vmem:[%s1667_s1] sm:$0xff]   ;;  %s1332_s30 = smov 96   ;;  %vm416_vm5 = vcmask 64512   ;;  %s1333_s5 = smov 64  }
  0x18   : > { %s209_s8 = scalar_select %p208_p13, %s1380_s19, 1  ;;  %v219_v17 = vunpack.c.l.bf16 %v1439_v16  ;;  %v218_v20 = vunpack.c.l.bf16 %v1445_v18  ;;  %v217_v21 = vunpack.c.l.bf16 %v1450_v19  ;;  %v1176_v31 = vld [vmem:[#allocation2] ss:$0 sm:$0xff]  ;;  %v1177_v34 = vld [vmem:[#allocation2 + $0x1] ss:$0 sm:$0xff]  ;;  %v1464_v41 = vld [vmem:[#allocation2 + $0x10] sm:$0xff] }
  0x19   : > { %357 = vmatpush.msra.mxu2 %v220_v15  ;;  %v1178_v37 = vld [vmem:[#allocation2 + $0x6] ss:$0 sm:$0xff]  ;;  %v1469_v44 = vld [vmem:[#allocation2 + $0x18] sm:$0xff]  ;;  %v1477_v48 = vld [vmem:[#allocation2 + $0x28] sm:$0xff]  ;;  %s1074_s6 = sshll.u32 %s1380_s19, 3  ;;  %s1280_s23 = scalar_lea.hbm %s1670_s4, 16 }
  0x1a   : > { %s1077_s9 = sshll.u32 %s209_s8, 4  ;;  %v1473_v46 = vld [vmem:[#allocation2 + $0x20] sm:$0xff]  ;;  %v301_v50 = vld [vmem:[#allocation2 + $0x30] sm:$0xff]  ;;  %v302_v54 = vld [vmem:[#allocation2 + $0x38] sm:$0xff] }
  0x1b   : > { %s1422_s12 = scalar_lea.vmem %s1666_s0, %s1077_s9  ;;  %358 = vmatpush.msra.mxu2 %v219_v17  ;;  %v303_v58 = vld [vmem:[#allocation2 + $0x40] sm:$0xff]  ;;  %v304_v62 = vld [vmem:[#allocation2 + $0x48] sm:$0xff]  ;;  %s964_s9 = scalar_lea.hbm %s1670_s4, %s1074_s6 }
  0x1c   : > { %v305_v0 = vld [vmem:[%s1422_s12] sm:$0xff]  ;;  %s968_s13 = sshll.u32 %s964_s9, 4  ;;  %s969_s13 = int_to_ptr.hbm [resolvable:$true] %s968_s13 }
  0x1d   : > { %v308_v1 = vsel %vm307_vm0, %v305_v0, 0.0  ;;  %v1189_v3 = vpop.eup %1188  ;;  %359 = vmatpush.msra.mxu2 %v218_v20 }
  0x1e   : > { %309 = vadd.xlane.f32.xlu0 %v308_v1  ;;  %v312_v4 = vmul.f32 32.0, %v1189_v3  ;;  %vm316_vm1 = vweird.f32 %v1189_v3 }
  0x1f   : > { %360 = vmatpush.msra.mxu2 %v217_v21 }
  0x20   : > { %v313_v5 = vsub.f32 1.0, %v312_v4 }
  0x22   : > { %v314_v6 = vmul.f32 %v1189_v3, %v313_v5 }
  0x24   : > { %v315_v7 = vadd.f32 %v1189_v3, %v314_v6 }
  0x26   : > { %v1426_v8 = vsel %vm316_vm1, %v1189_v3, %v315_v7 }
  0x91   : > { %v310_v9 = vpop.xlane.xlu0 %309 }
  0x92   : > { %v318_v10 = vmul.f32 %v1426_v8, %v310_v9 }
  0x94   : > { %v319_v11 = vsub.f32 %v305_v0, %v318_v10 }
  0x96   : > { %v320_v12 = vmul.f32 %v319_v11, %v319_v11 }
  0x98   : > { %v321_v13 = vsel %vm307_vm0, %v320_v12, 0.0 }
  0x99   : > { %322 = vadd.xlane.f32.xlu0 %v321_v13 }
 0x10c   : > { %v323_v22 = vpop.xlane.xlu0 %322 }
 0x10d   : > { %v324_v23 = vmul.f32 %v323_v22, %v1426_v8 }
 0x10f   : > { %v325_v24 = vadd.f32 1e-05, %v324_v23 }
 0x111   : > { %1190 = vrsqrt.f32 %v325_v24  ;;  %vm332_vm3 = vweird.f32 %v325_v24 }
 0x117   : > { %v1191_v25 = vpop.eup %1190 }
 0x118   : > { %v327_v26 = vmul.f32 %v1191_v25, %v325_v24  ;;  %vm333_vm2 = vweird.f32 %v1191_v25 }
 0x119   : > { %vm334_vm4 = vmor %vm332_vm3, %vm333_vm2 }
 0x11a   : > { %v328_v27 = vmul.f32 %v1191_v25, %v327_v26 }
 0x11c   : > { %v329_v28 = vmul.f32 0.5, %v328_v27 }
 0x11e   : > { %v330_v29 = vsub.f32 1.5, %v329_v28 }
 0x120   : > { %v331_v30 = vmul.f32 %v1191_v25, %v330_v29 }
 0x122   : > { %v335_v32 = vsel %vm334_vm4, %v1191_v25, %v331_v30 }
 0x123   : > { %v336_v33 = vmul.f32 %v335_v32, %v319_v11 }
 0x125   : > { %v338_v35 = vmul.f32 %v1176_v31, %v336_v33 }
 0x127   : > { %v1455_v36 = vadd.f32 %v1177_v34, %v338_v35 }
 0x129   : > { %1049 = vmatmul.msk.f32.vlgmr.msra.gmra.mxu2 %vm307_vm0, %v1455_v36 }
 0x1ac   : > { %v362_v38 = vpop.f32.mrf.mxu2 }
 0x1ad   : > { %v1459_v39 = vadd.f32 %v1178_v37, %v362_v38 }
 0x1af   : > { %371 = vrot.lane.b32.xlu1 %v1459_v39, %s1332_s30  ;;  %v365_v40 = vmul.f32 0.35355338, %v1459_v39 }
 0x1b1   : > { %v366_v43 = vmul.f32 %v365_v40, %v1464_v41  ;;  %v367_v45 = vmul.f32 %v365_v40, %v1469_v44  ;;  %v368_v47 = vmul.f32 %v365_v40, %v1473_v46  ;;  %v369_v49 = vmul.f32 %v365_v40, %v1477_v48 }
 0x221   : > { %v372_v42 = vpop.permute.xlu1 %371 }
 0x222   : > { %1050 = vmatpush.xpose.msk.msra.mxu1 %vm307_vm0, %v372_v42 }
 0x225   : > { %1051 = vmatmul.msk.f32.vlgmr.msra.gmra.mxu1 %vm307_vm0, %v366_v43 }
 0x22d   : > { %1052 = vmatmul.msk.f32.gmra.mxu1 %vm307_vm0, %v367_v45 }
 0x235   : > { %1053 = vmatmul.msk.f32.gmra.mxu1 %vm307_vm0, %v368_v47 }
 0x23d   : > { %1054 = vmatmul.msk.f32.gmra.mxu1 %vm307_vm0, %v369_v49 }
 0x2a2   : > { %v404_v51 = vpop.f32.mrf.mxu1 }
 0x2a3   : > { %v405_v52 = vadd.f32 %v404_v51, %v301_v50 }
 0x2a5   : > { %v417_v53 = vsel %vm416_vm5, %v405_v52, -inf }
 0x2a6   : > { %418 = vmax.xlane.f32.xlu1 %v417_v53 }
 0x2aa   : > { %v407_v55 = vpop.f32.mrf.mxu1 }
 0x2ab   : > { %v408_v56 = vadd.f32 %v407_v55, %v302_v54 }
 0x2ad   : > { %v420_v57 = vsel %vm416_vm5, %v408_v56, -inf }
 0x2ae   : > { %421 = vmax.xlane.f32.xlu2 %v420_v57 }
 0x2b2   : > { %v410_v59 = vpop.f32.mrf.mxu1 }
 0x2b3   : > { %v411_v60 = vadd.f32 %v410_v59, %v303_v58 }
 0x2b5   : > { %v423_v61 = vsel %vm416_vm5, %v411_v60, -inf }
 0x2b6   : > { %424 = vmax.xlane.f32.xlu2 %v423_v61 }
 0x2ba   : > { %v413_v63 = vpop.f32.mrf.mxu1 }
 0x2bb   : > { %v414_v0 = vadd.f32 %v413_v63, %v304_v62 }
 0x2bd   : > { %v426_v1 = vsel %vm416_vm5, %v414_v0, -inf }
 0x2be   : > { %427 = vmax.xlane.f32.xlu0 %v426_v1 }
 0x319   : > { %v419_v2 = vpop.xlane.xlu1 %418 }
 0x31a   : > { %v429_v3 = vsub.f32 %v405_v52, %v419_v2 }
 0x31c   : > { %v433_v4 = vmul.f32 1.442695, %v429_v3 }
 0x31e   : > { %1192 = vpow2.f32 %v433_v4 }
 0x321   : > { %v422_v5 = vpop.xlane.xlu2 %421 }
 0x322   : > { %v430_v6 = vsub.f32 %v408_v56, %v422_v5 }
 0x324   : > { %v1193_v7 = vpop.eup %1192  ;;  %v435_v9 = vmul.f32 1.442695, %v430_v6 }
 0x325   : > { %v441_v10 = vsel %vm416_vm5, %v1193_v7, 0.0 }
 0x326   : > { %1194 = vpow2.f32 %v435_v9  ;;  %442 = vadd.xlane.f32.xlu2 %v441_v10 }
 0x329   : > { %v425_v11 = vpop.xlane.xlu2 %424 }
 0x32a   : > { %v431_v12 = vsub.f32 %v411_v60, %v425_v11 }
 0x32c   : > { %v1486_v13 = vpop.eup %1194  ;;  %v437_v15 = vmul.f32 1.442695, %v431_v12 }
 0x32d   : > { %v444_v17 = vsel %vm416_vm5, %v1486_v13, 0.0 }
 0x32e   : > { %1196 = vpow2.f32 %v437_v15  ;;  %445 = vadd.xlane.f32.xlu0 %v444_v17 }
 0x331   : > { %v428_v20 = vpop.xlane.xlu0 %427 }
 0x332   : > { %v432_v21 = vsub.f32 %v414_v0, %v428_v20 }
 0x334   : > { %v1490_v22 = vpop.eup %1196  ;;  %v439_v23 = vmul.f32 1.442695, %v432_v21 }
 0x335   : > { %v447_v24 = vsel %vm416_vm5, %v1490_v22, 0.0 }
 0x336   : > { %1198 = vpow2.f32 %v439_v23  ;;  %448 = vadd.xlane.f32.xlu2 %v447_v24  ;;  %v228_v23 = vunpack.c.h.bf16 %v1433_v14  ;;  %v227_v24 = vunpack.c.h.bf16 %v1439_v16 }
 0x338   : > { %579 = vmatpush.msra.mxu3 %v228_v23 }
 0x33a   : > { %580 = vmatpush.msra.mxu3 %v227_v24 }
 0x33c   : > { %v1494_v25 = vpop.eup %1198 }
 0x33d   : > { %v450_v26 = vsel %vm416_vm5, %v1494_v25, 0.0 }
 0x33e   : > { %451 = vadd.xlane.f32.xlu2 %v450_v26  ;;  %v225_v26 = vunpack.c.h.bf16 %v1450_v19 }
 0x342   : > { %513 = vrot.lane.b32.xlu0 %v1459_v39, %s1333_s5 }
 0x399   : > { %v443_v27 = vpop.xlane.xlu2 %442 }
 0x39a   : > { %1200 = vrcp.f32 %v443_v27  ;;  %v464_v38 = vand.u32 2147483648, %v443_v27  ;;  %vm458_vm7 = vweird.f32 %v443_v27  ;;  %v462_v42 = vand.u32 2147483647, %v443_v27 }
 0x39c   : > { %v465_v45 = vor.u32 1.1754944e-38, %v464_v38  ;;  %vm463_vm9 = vcmp.eq.f32.partialorder %v462_v42, 8.507059e+37  ;;  %v1526_v42 = vld [vmem:[%s1667_s1 + $0x30] sm:$0xff]  }
 0x3a0   : > { %v1201_v28 = vpop.eup %1200 }
 0x3a1   : > { %v454_v29 = vmul.f32 %v1201_v28, %v443_v27  ;;  %v446_v30 = vpop.xlane.xlu0 %445  ;;  %vm459_vm6 = vweird.f32 %v1201_v28 }
 0x3a2   : > { %1202 = vrcp.f32 %v446_v30  ;;  %vm460_vm8 = vmor %vm458_vm7, %vm459_vm6  ;;  %v479_v53 = vand.u32 2147483648, %v446_v30  ;;  %vm473_vm11 = vweird.f32 %v446_v30  ;;  %v477_v57 = vand.u32 2147483647, %v446_v30 }
 0x3a3   : > { %v455_v31 = vsub.f32 1.0, %v454_v29 }
 0x3a4   : > { %v480_v60 = vor.u32 1.1754944e-38, %v479_v53  ;;  %vm478_vm13 = vcmp.eq.f32.partialorder %v477_v57, 8.507059e+37 }
 0x3a5   : > { %v456_v32 = vmul.f32 %v1201_v28, %v455_v31 }
 0x3a7   : > { %v457_v37 = vadd.f32 %v1201_v28, %v456_v32 }
 0x3a8   : > { %v1203_v33 = vpop.eup %1202 }
 0x3a9   : > { %v469_v34 = vmul.f32 %v1203_v33, %v446_v30  ;;  %v449_v35 = vpop.xlane.xlu2 %448  ;;  %v461_v43 = vsel %vm460_vm8, %v1201_v28, %v457_v37  ;;  %vm474_vm10 = vweird.f32 %v1203_v33 }
 0x3aa   : > { %1204 = vrcp.f32 %v449_v35  ;;  %v466_v51 = vsel %vm463_vm9, %v465_v45, %v461_v43  ;;  %vm475_vm12 = vmor %vm473_vm11, %vm474_vm10  ;;  %v494_v1 = vand.u32 2147483648, %v449_v35  ;;  %vm488_vm15 = vweird.f32 %v449_v35  ;;  %v1538_v45 = vld [vmem:[%s1667_s1 + $0x8] sm:$0xff]  }
 0x3ab   : > { %v470_v40 = vsub.f32 1.0, %v469_v34  ;;  %v467_v56 = vmul.f32 %v1193_v7, %v466_v51  ;;  %v492_v4 = vand.u32 2147483647, %v449_v35  ;;  %v235_v43 = vunpack.c.l.bf16 %v1526_v42 }
 0x3ac   : > { %v495_v7 = vor.u32 1.1754944e-38, %v494_v1 }
 0x3ad   : > { %v471_v39 = vmul.f32 %v1203_v33, %v470_v40  ;;  %vm493_vm2 = vcmp.eq.f32.partialorder %v492_v4, 8.507059e+37  ;;  %v1521_v40 = vld [vmem:[%s1667_s1 + $0x44] sm:$0xff]   ;;  %v1180_v4 = vld [vmem:[#allocation2 + $0x2] ss:$0 sm:$0xff] }
 0x3af   : > { %v472_v52 = vadd.f32 %v1203_v33, %v471_v39  ;;  %v1531_v39 = vld [vmem:[%s1667_s1 + $0x1c] sm:$0xff]  }
 0x3b0   : > { %v1205_v47 = vpop.eup %1204 }
 0x3b1   : > { %v484_v49 = vmul.f32 %v1205_v47, %v449_v35  ;;  %v452_v50 = vpop.xlane.xlu2 %451  ;;  %v476_v59 = vsel %vm475_vm12, %v1203_v33, %v472_v52  ;;  %vm489_vm14 = vweird.f32 %v1205_v47 }
 0x3b2   : > { %1206 = vrcp.f32 %v452_v50  ;;  %v481_v63 = vsel %vm478_vm13, %v480_v60, %v476_v59  ;;  %vm490_vm1 = vmor %vm488_vm15, %vm489_vm14  ;;  %v509_v11 = vand.u32 2147483648, %v452_v50  ;;  %vm503_vm4 = vweird.f32 %v452_v50 }
 0x3b3   : > { %v485_v54 = vsub.f32 1.0, %v484_v49  ;;  %v482_v3 = vmul.f32 %v1486_v13, %v481_v63  ;;  %v507_v15 = vand.u32 2147483647, %v452_v50  ;;  %v233_v49 = vunpack.c.l.bf16 %v1538_v45 }
 0x3b4   : > { %v514_v55 = vpop.permute.xlu0 %513  ;;  %v510_v17 = vor.u32 1.1754944e-38, %v509_v11 }
 0x3b5   : > { %543 = vmatpush.msrb.mxu2 %v514_v55  ;;  %v486_v58 = vmul.f32 %v1205_v47, %v485_v54  ;;  %vm508_vm7 = vcmp.eq.f32.partialorder %v507_v15, 8.507059e+37 }
 0x3b6   : > { %1055 = vmatmul.msk.f32.vlgmr.msrb.gmra.mxu2 %vm416_vm5, %v467_v56  ;;  %v1182_v56 = vld [vmem:[#allocation2 + $0x8] ss:$0 sm:$0xff] }
 0x3b7   : > { %v487_v0 = vadd.f32 %v1205_v47, %v486_v58 }
 0x3b8   : > { %v1207_v61 = vpop.eup %1206 }
 0x3b9   : > { %v499_v62 = vmul.f32 %v1207_v61, %v452_v50  ;;  %v491_v6 = vsel %vm490_vm1, %v1205_v47, %v487_v0  ;;  %vm504_vm3 = vweird.f32 %v1207_v61  ;;  %v234_v47 = vunpack.c.l.bf16 %v1531_v39  ;;  %v306_v50 = vld [vmem:[%s1422_s12 + $0x8] sm:$0xff]  ;;  %s1274_s12 = sshra.s32 %s969_s13, 4  ;;  %s1275_s12 = int_to_ptr.hbm [resolvable:$true] %s1274_s12 }
 0x3ba   : > { %v496_v9 = vsel %vm493_vm2, %v495_v7, %v491_v6  ;;  %vm505_vm6 = vmor %vm503_vm4, %vm504_vm3  ;;  %v1181_v7 = vld [vmem:[#allocation2 + $0x3] ss:$0 sm:$0xff]  ;;  %s1276_s19 = scalar_lea.hbm %s1275_s12, 8  ;;  %p1281_p3 = scmp.lt.s32.totalorder %s1275_s12, %s1670_s4 }
 0x3bb   : > { %v500_v2 = vsub.f32 1.0, %v499_v62  ;;  %v497_v12 = vmul.f32 %v1490_v22, %v496_v9  ;;  %v226_v22 = vunpack.c.h.bf16 %v1445_v18  ;;  %v1179_v18 = vld [vmem:[#allocation2 + $0x7] ss:$0 sm:$0xff]  ;;  %p1277_p0 = scmp.ne.s32.totalorder %s1275_s12, %s1276_s19  ;;  %p1282_p4 = scmp.lt.s32.totalorder %s1280_s23, %s1276_s19 }
 0x3bd   : > { %v501_v5 = vmul.f32 %v1207_v61, %v500_v2  ;;  %581 = vmatpush.msra.mxu3 %v226_v22  ;;  %p1278_p1 = pnand %p1277_p0, %p1397_p5  ;;  %p1283_p7 = por %p1282_p4, %p1281_p3 }
 0x3be   : > { %1056 = vmatmul.msk.f32.gmra.mxu2 %vm416_vm5, %v482_v3 }
 0x3bf   : > { %v502_v10 = vadd.f32 %v1207_v61, %v501_v5  ;;  %582 = vmatpush.msra.mxu3 %v225_v26  ;;  %p1279_p2 = pneg %p1278_p1 }
 0x3c1   : > { %v506_v13 = vsel %vm505_vm6, %v1207_v61, %v502_v10  ;;  %p1284_p8 = pnand %p1283_p7, %p1279_p2 }
 0x3c2   : > { %v511_v20 = vsel %vm508_vm7, %v510_v17, %v506_v13 }
 0x3c3   : > { %v512_v21 = vmul.f32 %v1494_v25, %v511_v20 }
 0x3c6   : > { %1057 = vmatmul.msk.f32.gmra.mxu2 %vm416_vm5, %v497_v12 }
 0x3ce   : > { %1058 = vmatmul.msk.f32.gmra.mxu2 %vm416_vm5, %v512_v21 }
 0x439   : > { %v545_v27 = vpop.f32.mrf.mxu2 }
 0x43a   : > { %v557_v25 = vmul.f32 %v545_v27, %v1464_v41 }
 0x441   : > { %v548_v28 = vpop.f32.mrf.mxu2 }
 0x442   : > { %v558_v30 = vmul.f32 %v548_v28, %v1469_v44 }
 0x444   : > { %v561_v14 = vadd.f32 %v558_v30, %v557_v25 }
 0x449   : > { %v551_v29 = vpop.f32.mrf.mxu2 }
 0x44a   : > { %v559_v31 = vmul.f32 %v551_v29, %v1473_v46 }
 0x44c   : > { %v562_v33 = vadd.f32 %v561_v14, %v559_v31 }
 0x451   : > { %v554_v32 = vpop.f32.mrf.mxu2 }
 0x452   : > { %v560_v16 = vmul.f32 %v554_v32, %v1477_v48 }
 0x454   : > { %v563_v34 = vadd.f32 %v562_v33, %v560_v16 }
 0x456   : > { %1059 = vmatmul.msk.f32.vlgmr.msra.gmra.mxu3 %vm307_vm0, %v563_v34 }
 0x4d9   : > { %v584_v19 = vpop.f32.mrf.mxu3 }
 0x4da   : > { %v587_v35 = vadd.f32 %v584_v19, %v1455_v36  ;;  %v236_v36 = vunpack.c.l.bf16 %v1521_v40 }
 0x4dc   : > { %v589_v37 = vadd.f32 %v1179_v18, %v587_v35  ;;  %1117 = vmatpush.msrb.mxu1 %v236_v36  ;;  %635 = vmatpush.msra.mxu0 %v236_v36 }
 0x4de   : > { %v590_v38 = vsel %vm307_vm0, %v589_v37, 0.0  ;;  %1118 = vmatpush.msrb.mxu1 %v235_v43  ;;  %636 = vmatpush.msra.mxu0 %v235_v43 }
 0x4df   : > { %591 = vadd.xlane.f32.xlu2 %v590_v38 }
 0x4e0   : > { %1119 = vmatpush.msrb.mxu1 %v234_v47  ;;  %637 = vmatpush.msra.mxu0 %v234_v47 }
 0x4e2   : > { %1120 = vmatpush.msrb.mxu1 %v233_v49  ;;  %638 = vmatpush.msra.mxu0 %v233_v49 }
 0x4e3   : > { %1061 = vmatmul.msk.f32.vlgmr.msrb.gmra.mxu1 %vm307_vm0, %v306_v50 }
 0x552   : > { %v592_v51 = vpop.xlane.xlu2 %591 }
 0x553   : > { %v593_v52 = vmul.f32 %v592_v51, %v1426_v8 }
 0x555   : > { %v594_v53 = vsub.f32 %v589_v37, %v593_v52 }
 0x557   : > { %v595_v54 = vmul.f32 %v594_v53, %v594_v53 }
 0x559   : > { %v596_v55 = vsel %vm307_vm0, %v595_v54, 0.0 }
 0x55a   : > { %597 = vadd.xlane.f32.xlu2 %v596_v55 }
 0x560   : > { %v643_v57 = vpop.f32.mrf.mxu1 }
 0x561   : > { %v644_v58 = vadd.f32 %v1182_v56, %v643_v57 }
 0x563   : > { %652 = vrot.lane.b32.xlu1 %v644_v58, %s1332_s30  ;;  %s205_s30 = sand.u32 1, %s1318_s16  }
 0x564   : > { %s954_s14 = scalar_lea.sflag [#allocation4], %s205_s30 }
 0x5cd   : > { %v598_v59 = vpop.xlane.xlu2 %597 }
 0x5ce   : > { %v599_v60 = vmul.f32 %v598_v59, %v1426_v8 }
 0x5d0   : > { %v600_v61 = vadd.f32 1e-05, %v599_v60 }
 0x5d2   : > { %1208 = vrsqrt.f32 %v600_v61  ;;  %vm607_vm9 = vweird.f32 %v600_v61 }
 0x5d5   : > { %v653_v11 = vpop.permute.xlu1 %652 }
 0x5d6   : > { %1062 = vmatpush.xpose.msk.msrb.mxu3 %vm307_vm0, %v653_v11 }
 0x5d8   : > { %v1209_v62 = vpop.eup %1208 }
 0x5d9   : > { %v602_v63 = vmul.f32 %v1209_v62, %v600_v61  ;;  %vm608_vm8 = vweird.f32 %v1209_v62 }
 0x5da   : > { %vm609_vm10 = vmor %vm607_vm9, %vm608_vm8 }
 0x5db   : > { %v603_v0 = vmul.f32 %v1209_v62, %v602_v63 }
 0x5dd   : > { %v604_v1 = vmul.f32 0.5, %v603_v0 }
 0x5df   : > { %v605_v2 = vsub.f32 1.5, %v604_v1 }
 0x5e1   : > { %v606_v3 = vmul.f32 %v1209_v62, %v605_v2 }
 0x5e3   : > { %v610_v5 = vsel %vm609_vm10, %v1209_v62, %v606_v3 }
 0x5e4   : > { %v611_v6 = vmul.f32 %v610_v5, %v594_v53 }
 0x5e6   : > { %v613_v9 = vmul.f32 %v1180_v4, %v611_v6 }
 0x5e8   : > { %v1548_v10 = vadd.f32 %v1181_v7, %v613_v9 }
 0x5ea   : > { %1060 = vmatmul.msk.f32.vlgmr.msra.gmra.mxu0 %vm307_vm0, %v1548_v10 }
 0x667   : > { %v640_v12 = vpop.f32.mrf.mxu0 }
 0x668   : > { %v641_v15 = vadd.f32 %v1182_v56, %v640_v12 }
 0x66a   : > { %v646_v13 = vmul.f32 0.35355338, %v641_v15 }
 0x66c   : > { %v647_v17 = vmul.f32 %v646_v13, %v1464_v41  ;;  %v648_v20 = vmul.f32 %v646_v13, %v1469_v44  ;;  %v649_v21 = vmul.f32 %v646_v13, %v1473_v46  ;;  %v650_v23 = vmul.f32 %v646_v13, %v1477_v48 }
 0x66e   : > { %1063 = vmatmul.msk.f32.vlgmr.msrb.gmra.mxu3 %vm307_vm0, %v647_v17 }
 0x676   : > { %1064 = vmatmul.msk.f32.gmra.mxu3 %vm307_vm0, %v648_v20 }
 0x67e   : > { %1065 = vmatmul.msk.f32.gmra.mxu3 %vm307_vm0, %v649_v21 }
 0x686   : > { %1066 = vmatmul.msk.f32.gmra.mxu3 %vm307_vm0, %v650_v23 }
 0x6f1   : > { %v685_v24 = vpop.f32.mrf.mxu3 }
 0x6f2   : > { %v697_v22 = vsel %vm416_vm5, %v685_v24, -inf }
 0x6f3   : > { %698 = vmax.xlane.f32.xlu0 %v697_v22 }
 0x6f9   : > { %v688_v26 = vpop.f32.mrf.mxu3 }
 0x6fa   : > { %v700_v27 = vsel %vm416_vm5, %v688_v26, -inf }
 0x6fb   : > { %701 = vmax.xlane.f32.xlu2 %v700_v27 }
 0x701   : > { %v691_v28 = vpop.f32.mrf.mxu3 }
 0x702   : > { %v703_v29 = vsel %vm416_vm5, %v691_v28, -inf }
 0x703   : > { %704 = vmax.xlane.f32.xlu2 %v703_v29 }
 0x707   : > { %793 = vrot.lane.b32.xlu0 %v644_v58, %s1333_s5  ;;  %s1046_s5 = sshll.u32 %s205_s30, 3 }
 0x708   : > { %s207_s10 = scalar_lea.vmem [#allocation5], %s1046_s5 }
 0x709   : > { %v694_v30 = vpop.f32.mrf.mxu3  ;;  %s966_s11 = sshll.u32 %s207_s10, 4  ;;  %s967_s11 = int_to_ptr.vmem [resolvable:$true] %s966_s11 }
 0x70a   : > { %v706_v25 = vsel %vm416_vm5, %v694_v30, -inf }
 0x70b   : > { %707 = vmax.xlane.f32.xlu2 %v706_v25 }
 0x766   : > { %v699_v31 = vpop.xlane.xlu0 %698 }
 0x767   : > { %v709_v14 = vsub.f32 %v685_v24, %v699_v31 }
 0x769   : > { %v713_v32 = vmul.f32 1.442695, %v709_v14 }
 0x76b   : > { %1210 = vpow2.f32 %v713_v32 }
 0x76e   : > { %v702_v33 = vpop.xlane.xlu2 %701 }
 0x76f   : > { %v710_v16 = vsub.f32 %v688_v26, %v702_v33 }
 0x771   : > { %v1211_v34 = vpop.eup %1210  ;;  %v715_v18 = vmul.f32 1.442695, %v710_v16 }
 0x772   : > { %v721_v19 = vsel %vm416_vm5, %v1211_v34, 0.0 }
 0x773   : > { %1212 = vpow2.f32 %v715_v18  ;;  %722 = vadd.xlane.f32.xlu1 %v721_v19 }
 0x776   : > { %v705_v35 = vpop.xlane.xlu2 %704 }
 0x777   : > { %v711_v37 = vsub.f32 %v691_v28, %v705_v35 }
 0x779   : > { %v1213_v38 = vpop.eup %1212  ;;  %v717_v36 = vmul.f32 1.442695, %v711_v37  ;;  %v794_v43 = vpop.permute.xlu0 %793 }
 0x77a   : > { %823 = vmatpush.msrb.mxu0 %v794_v43  ;;  %v724_v47 = vsel %vm416_vm5, %v1213_v38, 0.0 }
 0x77b   : > { %1214 = vpow2.f32 %v717_v36  ;;  %725 = vadd.xlane.f32.xlu2 %v724_v47 }
 0x77e   : > { %v708_v49 = vpop.xlane.xlu2 %707 }
 0x77f   : > { %v712_v50 = vsub.f32 %v694_v30, %v708_v49 }
 0x781   : > { %v1568_v51 = vpop.eup %1214  ;;  %v719_v52 = vmul.f32 1.442695, %v712_v50  ;;  %v244_v50 = vunpack.c.h.bf16 %v1521_v40 }
 0x782   : > { %v727_v53 = vsel %vm416_vm5, %v1568_v51, 0.0 }
 0x783   : > { %1216 = vpow2.f32 %v719_v52  ;;  %728 = vadd.xlane.f32.xlu2 %v727_v53  ;;  %859 = vmatpush.msra.mxu2 %v244_v50  ;;  %v242_v52 = vunpack.c.h.bf16 %v1531_v39  ;;  %v241_v53 = vunpack.c.h.bf16 %v1538_v45  ;;  %v1183_v39 = vld [vmem:[#allocation2 + $0x9] ss:$0 sm:$0xff] }
 0x784   : > { %v1110_v50 = vld [vmem:[%s1669_s3 + $0x8] sm:$0xff]  }
 0x789   : > { %v1572_v54 = vpop.eup %1216 }
 0x78a   : > { %v730_v55 = vsel %vm416_vm5, %v1572_v54, 0.0 }
 0x78b   : > { %731 = vadd.xlane.f32.xlu2 %v730_v55 }
 0x7e6   : > { %v723_v56 = vpop.xlane.xlu1 %722 }
 0x7e7   : > { %1218 = vrcp.f32 %v723_v56  ;;  %v744_v61 = vand.u32 2147483648, %v723_v56  ;;  %v742_v63 = vand.u32 2147483647, %v723_v56  ;;  %vm738_vm12 = vweird.f32 %v723_v56 }
 0x7e9   : > { %v745_v2 = vor.u32 1.1754944e-38, %v744_v61  ;;  %vm743_vm14 = vcmp.eq.f32.partialorder %v742_v63, 8.507059e+37 }
 0x7ed   : > { %v1219_v57 = vpop.eup %1218 }
 0x7ee   : > { %v734_v58 = vmul.f32 %v1219_v57, %v723_v56  ;;  %v726_v59 = vpop.xlane.xlu2 %725  ;;  %vm739_vm11 = vweird.f32 %v1219_v57 }
 0x7ef   : > { %1220 = vrcp.f32 %v726_v59  ;;  %vm740_vm13 = vmor %vm738_vm12, %vm739_vm11  ;;  %v759_v11 = vand.u32 2147483648, %v726_v59  ;;  %v757_v15 = vand.u32 2147483647, %v726_v59  ;;  %vm753_vm1 = vweird.f32 %v726_v59 }
 0x7f0   : > { %v735_v60 = vsub.f32 1.0, %v734_v58 }
 0x7f1   : > { %v760_v20 = vor.u32 1.1754944e-38, %v759_v11  ;;  %vm758_vm3 = vcmp.eq.f32.partialorder %v757_v15, 8.507059e+37  ;;  %v1115_v15 = vld [vmem:[%s1669_s3 + $0x30] sm:$0xff]  }
 0x7f2   : > { %v736_v62 = vmul.f32 %v1219_v57, %v735_v60 }
 0x7f4   : > { %v737_v0 = vadd.f32 %v1219_v57, %v736_v62 }
 0x7f5   : > { %v1221_v1 = vpop.eup %1220 }
 0x7f6   : > { %v741_v3 = vsel %vm740_vm13, %v1219_v57, %v737_v0  ;;  %v749_v4 = vmul.f32 %v1221_v1, %v726_v59  ;;  %v729_v5 = vpop.xlane.xlu2 %728  ;;  %vm754_vm15 = vweird.f32 %v1221_v1 }
 0x7f7   : > { %1222 = vrcp.f32 %v729_v5  ;;  %v746_v6 = vsel %vm743_vm14, %v745_v2, %v741_v3  ;;  %vm755_vm2 = vmor %vm753_vm1, %vm754_vm15  ;;  %v774_v28 = vand.u32 2147483648, %v729_v5  ;;  %v772_v30 = vand.u32 2147483647, %v729_v5 }
 0x7f8   : > { %v750_v7 = vsub.f32 1.0, %v749_v4  ;;  %v747_v9 = vmul.f32 %v1211_v34, %v746_v6  ;;  %vm768_vm6 = vweird.f32 %v729_v5  ;;  %v246_v6 = vld [vmem:[%s1667_s1 + $0x24] sm:$0xf] }
 0x7f9   : > { %v775_v14 = vor.u32 1.1754944e-38, %v774_v28  ;;  %vm773_vm8 = vcmp.eq.f32.partialorder %v772_v30, 8.507059e+37 }
 0x7fa   : > { %v751_v12 = vmul.f32 %v1221_v1, %v750_v7  ;;  %1067 = vmatmul.msk.f32.vlgmr.msrb.gmra.mxu0 %vm416_vm5, %v747_v9  ;;  %v250_v7 = vunpack.c.l.bf16 %v246_v6  ;;  %v245_v9 = vld [vmem:[%s1667_s1 + $0x10] sm:$0xf] }
 0x7fb   : > { %v249_v11 = vunpack.c.l.bf16 %v245_v9 }
 0x7fc   : > { %v752_v13 = vadd.f32 %v1221_v1, %v751_v12  ;;  %v1116_v12 = vld [vmem:[%s1669_s3 + $0x38] sm:$0xff]  }
 0x7fd   : > { %v1223_v17 = vpop.eup %1222 }
 0x7fe   : > { %v764_v21 = vmul.f32 %v1223_v17, %v729_v5  ;;  %v732_v23 = vpop.xlane.xlu2 %731  ;;  %v756_v24 = vsel %vm755_vm2, %v1221_v1, %v752_v13  ;;  %vm769_vm4 = vweird.f32 %v1223_v17  ;;  %v1109_v13 = vunpack.c.h.bf16 %v1116_v12 }
 0x7ff   : > { %1224 = vrcp.f32 %v732_v23  ;;  %v761_v22 = vsel %vm758_vm3, %v760_v20, %v756_v24  ;;  %vm770_vm7 = vmor %vm768_vm6, %vm769_vm4  ;;  %v789_v19 = vand.u32 2147483648, %v732_v23  ;;  %v787_v37 = vand.u32 2147483647, %v732_v23 }
 0x800   : > { %v765_v26 = vsub.f32 1.0, %v764_v21  ;;  %v762_v27 = vmul.f32 %v1213_v38, %v761_v22  ;;  %vm783_vm10 = vweird.f32 %v732_v23  ;;  %929 = vmatpush.msra.mxu3 %v1109_v13  ;;  %v1105_v21 = vunpack.c.h.bf16 %v1115_v15 }
 0x801   : > { %v790_v36 = vor.u32 1.1754944e-38, %v789_v19  ;;  %vm788_vm12 = vcmp.eq.f32.partialorder %v787_v37, 8.507059e+37 }
 0x802   : > { %v766_v29 = vmul.f32 %v1223_v17, %v765_v26  ;;  %1068 = vmatmul.msk.f32.gmra.mxu0 %vm416_vm5, %v762_v27 }
 0x804   : > { %v767_v25 = vadd.f32 %v1223_v17, %v766_v29 }
 0x805   : > { %v1225_v31 = vpop.eup %1224 }
 0x806   : > { %v779_v32 = vmul.f32 %v1225_v31, %v732_v23  ;;  %v771_v33 = vsel %vm770_vm7, %v1223_v17, %v767_v25  ;;  %vm784_vm9 = vweird.f32 %v1225_v31  ;;  %v1108_v17 = vunpack.c.l.bf16 %v1116_v12  ;;  %v1184_v25 = vld [vmem:[#allocation2 + $0x4] ss:$0 sm:$0xff] }
 0x807   : > { %v776_v16 = vsel %vm773_vm8, %v775_v14, %v771_v33  ;;  %vm785_vm11 = vmor %vm783_vm10, %vm784_vm9 }
 0x808   : > { %v780_v34 = vsub.f32 1.0, %v779_v32  ;;  %v777_v18 = vmul.f32 %v1568_v51, %v776_v16  ;;  %v243_v51 = vunpack.c.h.bf16 %v1526_v42  ;;  %930 = vmatpush.msra.mxu3 %v1108_v17  ;;  %v1185_v32 = vld [vmem:[#allocation2 + $0x5] ss:$0 sm:$0xff] }
 0x80a   : > { %v781_v35 = vmul.f32 %v1225_v31, %v780_v34  ;;  %1069 = vmatmul.msk.f32.gmra.mxu0 %vm416_vm5, %v777_v18  ;;  %860 = vmatpush.msra.mxu2 %v243_v51  ;;  %v1114_v34 = vld [vmem:[%s1669_s3 + $0x28] sm:$0xff]  }
 0x80b   : > { %931 = vmatpush.msra.mxu3 %v1105_v21  ;;  %v1101_v18 = vunpack.c.h.bf16 %v1114_v34  ;;  %v1100_v19 = vunpack.c.l.bf16 %v1114_v34 }
 0x80c   : > { %v782_v38 = vadd.f32 %v1225_v31, %v781_v35  ;;  %861 = vmatpush.msra.mxu2 %v242_v52  ;;  %v1113_v35 = vld [vmem:[%s1669_s3 + $0x20] sm:$0xff]  }
 0x80d   : > { %v1097_v37 = vunpack.c.h.bf16 %v1113_v35 }
 0x80e   : > { %v786_v43 = vsel %vm785_vm11, %v1225_v31, %v782_v38  ;;  %862 = vmatpush.msra.mxu2 %v241_v53  ;;  %v1096_v38 = vunpack.c.l.bf16 %v1113_v35  ;;  %v1085_v53 = vunpack.c.h.bf16 %v1110_v50 }
 0x80f   : > { %v791_v47 = vsel %vm788_vm12, %v790_v36, %v786_v43  ;;  %v1112_v36 = vld [vmem:[%s1669_s3 + $0x18] sm:$0xff]  }
 0x810   : > { %v792_v49 = vmul.f32 %v1572_v54, %v791_v47  ;;  %v1093_v43 = vunpack.c.h.bf16 %v1112_v36  ;;  %v1092_v47 = vunpack.c.l.bf16 %v1112_v36 }
 0x812   : > { %1070 = vmatmul.msk.f32.gmra.mxu0 %vm416_vm5, %v792_v49  ;;  %v1111_v49 = vld [vmem:[%s1669_s3 + $0x10] sm:$0xff]  }
 0x813   : > { %v1089_v51 = vunpack.c.h.bf16 %v1111_v49  ;;  %v1088_v52 = vunpack.c.l.bf16 %v1111_v49 }
 0x877   : > { %v825_v55 = vpop.f32.mrf.mxu0 }
 0x878   : > { %v837_v54 = vmul.f32 %v825_v55, %v1464_v41  ;;  %v1079_v55 = vld [vmem:[%s1669_s3] sm:$0xff]  }
 0x87f   : > { %v828_v56 = vpop.f32.mrf.mxu0 }
 0x880   : > { %v838_v58 = vmul.f32 %v828_v56, %v1469_v44  ;;  %v1084_v56 = vunpack.c.l.bf16 %v1110_v50 }
 0x882   : > { %v841_v40 = vadd.f32 %v838_v58, %v837_v54  ;;  %v1080_v58 = vunpack.c.l.bf16 %v1079_v55  ;;  %v1186_v54 = vld [vmem:[#allocation2 + $0xa] ss:$0 sm:$0xff] }
 0x887   : > { %v831_v57 = vpop.f32.mrf.mxu0 }
 0x888   : > { %v839_v59 = vmul.f32 %v831_v57, %v1473_v46  ;;  %v1081_v57 = vunpack.c.h.bf16 %v1079_v55 }
 0x88a   : > { %v842_v61 = vadd.f32 %v841_v40, %v839_v59 }
 0x88f   : > { %v834_v60 = vpop.f32.mrf.mxu0 }
 0x890   : > { %v840_v42 = vmul.f32 %v834_v60, %v1477_v48  ;;  %v248_v48 = vld [vmem:[%s1667_s1 + $0x4c] sm:$0xf] }
 0x891   : > { %v252_v4 = vunpack.c.l.bf16 %v248_v48 }
 0x892   : > { %v843_v62 = vadd.f32 %v842_v61, %v840_v42 }
 0x893   : > { %912 = vmatpush.msra.mxu1 %v252_v4 }
 0x894   : > { %1071 = vmatmul.msk.f32.vlgmr.msra.gmra.mxu2 %vm307_vm0, %v843_v62 }
 0x917   : > { %v864_v45 = vpop.f32.mrf.mxu2 }
 0x918   : > { %v867_v63 = vadd.f32 %v864_v45, %v1548_v10  ;;  %v247_v10 = vld [vmem:[%s1667_s1 + $0x38] sm:$0xf] }
 0x919   : > { %v251_v5 = vunpack.c.l.bf16 %v247_v10 }
 0x91a   : > { %v869_v0 = vadd.f32 %v1183_v39, %v867_v63 }
 0x91b   : > { %913 = vmatpush.msra.mxu1 %v251_v5 }
 0x91c   : > { %v870_v1 = vsel %vm307_vm0, %v869_v0, 0.0 }
 0x91d   : > { %871 = vadd.xlane.f32.xlu2 %v870_v1  ;;  %914 = vmatpush.msra.mxu1 %v250_v7 }
 0x91f   : > { %915 = vmatpush.msra.mxu1 %v249_v11 }
 0x990   : > { %v872_v44 = vpop.xlane.xlu2 %871 }
 0x991   : > { %v873_v41 = vmul.f32 %v872_v44, %v1426_v8  ;;  %v1187_v44 = vld [vmem:[#allocation2 + $0xb] ss:$0 sm:$0xff] }
 0x993   : > { %v874_v46 = vsub.f32 %v869_v0, %v873_v41 }
 0x995   : > { %v875_v2 = vmul.f32 %v874_v46, %v874_v46 }
 0x997   : > { %v876_v3 = vsel %vm307_vm0, %v875_v2, 0.0 }
 0x998   : > { %877 = vadd.xlane.f32.xlu2 %v876_v3 }
 0xa0b   : > { %v878_v20 = vpop.xlane.xlu2 %877 }
 0xa0c   : > { %v879_v23 = vmul.f32 %v878_v20, %v1426_v8  ;;  %v1104_v8 = vunpack.c.l.bf16 %v1115_v15 }
 0xa0e   : > { %v880_v24 = vadd.f32 1e-05, %v879_v23  ;;  %932 = vmatpush.msra.mxu3 %v1104_v8 }
 0xa10   : > { %1226 = vrsqrt.f32 %v880_v24  ;;  %vm887_vm13 = vweird.f32 %v880_v24  ;;  %933 = vmatpush.msra.mxu3 %v1101_v18 }
 0xa12   : > { %934 = vmatpush.msra.mxu3 %v1100_v19 }
 0xa14   : > { %935 = vmatpush.msra.mxu3 %v1097_v37 }
 0xa16   : > { %v1227_v22 = vpop.eup %1226  ;;  %936 = vmatpush.msra.mxu3 %v1096_v38 }
 0xa17   : > { %v882_v26 = vmul.f32 %v1227_v22, %v880_v24  ;;  %vm888_vm5 = vweird.f32 %v1227_v22 }
 0xa18   : > { %vm889_vm14 = vmor %vm887_vm13, %vm888_vm5  ;;  %937 = vmatpush.msra.mxu3 %v1093_v43 }
 0xa19   : > { %v883_v27 = vmul.f32 %v1227_v22, %v882_v26 }
 0xa1a   : > { %938 = vmatpush.msra.mxu3 %v1092_v47 }
 0xa1b   : > { %v884_v28 = vmul.f32 0.5, %v883_v27 }
 0xa1c   : > { %939 = vmatpush.msra.mxu3 %v1089_v51 }
 0xa1d   : > { %v885_v29 = vsub.f32 1.5, %v884_v28 }
 0xa1e   : > { %940 = vmatpush.msra.mxu3 %v1088_v52 }
 0xa1f   : > { %v886_v30 = vmul.f32 %v1227_v22, %v885_v29 }
 0xa20   : > { %941 = vmatpush.msra.mxu3 %v1085_v53 }
 0xa21   : > { %v890_v31 = vsel %vm889_vm14, %v1227_v22, %v886_v30 }
 0xa22   : > { %v891_v14 = vmul.f32 %v890_v31, %v874_v46  ;;  %942 = vmatpush.msra.mxu3 %v1084_v56 }
 0xa24   : > { %v893_v33 = vmul.f32 %v1184_v25, %v891_v14  ;;  %943 = vmatpush.msra.mxu3 %v1081_v57 }
 0xa26   : > { %v895_v16 = vadd.f32 %v1185_v32, %v893_v33  ;;  %944 = vmatpush.msra.mxu3 %v1080_v58 }
 0xa28   : > { %1072 = vmatmul.msk.f32.vlgmr.msra.gmra.mxu1 %vm307_vm0, %v895_v16 }
 0xaa5   : > { %v917_v59 = vpop.f32.mrf.mxu1 }
 0xaa6   : > { %v918_v40 = vadd.f32 %v1186_v54, %v917_v59 }
 0xaa8   : > { %v920_v60 = vmul.f32 %v918_v40, %v918_v40 }
 0xaaa   : > { %v921_v61 = vmul.f32 %v920_v60, %v918_v40 }
 0xaac   : > { %v922_v42 = vmul.f32 0.044715, %v921_v61 }
 0xaae   : > { %v923_v62 = vadd.f32 %v922_v42, %v918_v40 }
 0xab0   : > { %v924_v39 = vmul.f32 0.7978846, %v923_v62 }
 0xab2   : > { %1228 = vtanh.f32 %v924_v39 }
 0xab8   : > { %v1229_v45 = vpop.eup %1228 }
 0xab9   : > { %v926_v63 = vadd.f32 1.0, %v1229_v45 }
 0xabb   : > { %v927_v0 = vmul.f32 0.5, %v926_v63 }
 0xabd   : > { %v928_v1 = vmul.f32 %v927_v0, %v918_v40 }
 0xabf   : > { %945 = vmatmul.f32.vlgmr.msra.gmra.mxu3 %v928_v1 }
 0xb42   : > { %v946_v41 = vpop.f32.mrf.mxu3 }
 0xb43   : > { %v949_v46 = vadd.f32 %v946_v41, %v895_v16 }
 0xb45   : > { %v951_v2 = vadd.f32 %v1187_v44, %v949_v46 }
 0xb47   : > { %952 = vst.msk [vmem:[%s207_s10] sm:$0xff] %vm307_vm0, %v951_v2 }
 0xb48   : > { %1287 = shalt.err (!%p1284_p8)
}
 0xb49   : > { %1125 = dma.vmem_to_hbm [thread:$0]  (%p1397_p5), %s967_s11, 128, %s969_s13, %s954_s14  }
 0xb4a PF: > { %p1137_p9 = scmp.ge.s32.totalorder %s1326_s18, 2  ;;  %s980_s29 = sand.u32 1, %s1314_s15  }
 0xb4b   : > { %s981_s30 = scalar_lea.sflag [#allocation4], %s980_s29 }
 0xb4c   : > { %p1132_p10 = pnand %p1137_p9, %p1401_p6 }
 0xb4e   : > { %p1133_p11 = pneg %p1132_p10 }
 0xb50   : > { %1309 = dma.done.wait (%p1133_p11), %s981_s30, 128  }
 0xb51   : > { %1311 = vsyncadd (%p1133_p11), %s981_s30, 4294967168  ;;  %p15_p12 = scmp.ge.s32.totalorder %s1384_s21, 4   ;;  %s1673_s15 = smov %s1318_s16 }
 0xb52   : > { %s1674_s16 = smov %s1322_s17  ;;  %s1675_s17 = smov %s1395_s24 }
 0xb53   : > { %s1676_s18 = smov %s1384_s21  ;;  %17 = sbr.rel (!%p15_p12) target bundleno = 4 (0x4), region = 76 }
 0xb58   :  { %987 = vsyncpa [#allocation3], 1 }
 0xb59   :  { %989 = vsyncpa [#allocation3 + $0x1], 1 }
 0xb5a   :  { %990 = vsyncpa [#allocation4], 1 }
 0xb5b   :  { %992 = vsyncpa [#allocation4 + $0x1], 1 }

</bundles_post_ra>
